<compile_context>
chip_gen: v5e
topology: v5e:2x2
jax: 0.10.0
libtpu: 0.0.40
codegen_flags: <defaults>
</compile_context>

<pallas_src>
import functools
import math

import jax
import jax.numpy as jnp
from jax.experimental import pallas as pl
from jax.experimental.pallas import tpu as pltpu

LANE = 128     # lane width of a vreg
SUBLANE = 8    # sublane count of a vreg (f32)


def _round_up(n, m):
    return ((n + m - 1) // m) * m


def _pad2d(a, shape):
    """Zero-pad a 2-D array up to `shape` (keeps dtype)."""
    out = jnp.zeros(shape, a.dtype)
    return out.at[: a.shape[0], : a.shape[1]].set(a)


# ---------------------------------------------------------------------------
# Kernel
# ---------------------------------------------------------------------------
def rnn_linear_kernel(x_ref, wih_t_ref, whh_t_ref, b_ref,
                      wlin_t_ref, blin_ref, out_ref):
    """Single-layer tanh RNN followed by a Linear layer (all dims lane-padded).

    x_ref      : (Sp, Ip)  f32   input sequence
    wih_t_ref  : (Ip, Hp)  bf16  W_ih^T
    whh_t_ref  : (Hp, Hp)  bf16  W_hh^T
    b_ref      : (1,  Hp)  f32   b_ih + b_hh
    wlin_t_ref : (Hp, Op)  bf16  W_lin^T
    blin_ref   : (1,  Op)  f32   b_lin
    out_ref    : (Sp, Op)  f32   output
    """
    seq = x_ref.shape[0]          # static
    w_dtype = wih_t_ref.dtype

    # Batched input projection in one MXU matmul (f32 accumulation).
    xw = jnp.dot(x_ref[...].astype(w_dtype), wih_t_ref[...],
                 preferred_element_type=jnp.float32) + b_ref[...]

    whh_t = whh_t_ref[...]        # (Hp, Hp) resident in vregs

    # Fully unrolled recurrence: h_t = tanh(xw_t + h_{t-1} @ W_hh^T), h_0 = 0.
    # Carry and history stay in registers; static slices only.
    h = jnp.zeros((1, whh_t.shape[1]), jnp.float32)
    hs = []
    for t in range(seq):
        pre = xw[t:t + 1, :] + jnp.dot(h.astype(w_dtype), whh_t,
                                       preferred_element_type=jnp.float32)
        h = jnp.tanh(pre)         # f32 tanh on the EUP
        hs.append(h)
    h_all = jnp.concatenate(hs, axis=0)       # (Sp, Hp), one contiguous value

    # Batched output projection; single lane-dense unmasked store.
    out_ref[...] = jnp.dot(h_all.astype(w_dtype), wlin_t_ref[...],
                           preferred_element_type=jnp.float32) + blin_ref[...]


# ---------------------------------------------------------------------------
# Wrapper
# ---------------------------------------------------------------------------
def prepare_params(params, weight_dtype=jnp.bfloat16):
    """One-time (hoisted) weight prep: transpose, combine biases, pad to the
    128-lane boundary, cast matmul operands to bf16."""
    H, I = params["w_ih"].shape
    O = params["w_lin"].shape[0]
    Ip, Hp, Op = _round_up(I, LANE), _round_up(H, LANE), _round_up(O, LANE)

    b = (params["b_ih"] + params["b_hh"]).reshape(1, H).astype(jnp.float32)
    blin = params["b_lin"].reshape(1, O).astype(jnp.float32)

    prepped = {
        "wih_t": _pad2d(params["w_ih"].T.astype(weight_dtype), (Ip, Hp)),
        "whh_t": _pad2d(params["w_hh"].T.astype(weight_dtype), (Hp, Hp)),
        "b": _pad2d(b, (1, Hp)),
        "wlin_t": _pad2d(params["w_lin"].T.astype(weight_dtype), (Hp, Op)),
        "blin": _pad2d(blin, (1, Op)),
    }
    meta = {"input_size": I, "hidden_size": H, "output_size": O}
    return prepped, meta


@functools.partial(jax.jit, static_argnames=("output_size",))
def rnn_model_forward(x, prepped, *, output_size):
    """Pallas equivalent of RNNModel.forward.

    x: (seq_len, input_size) f32 (PyTorch forward unsqueezes batch=1).
    Returns (1, seq_len, output_size), matching the PyTorch module.
    """
    seq, _ = x.shape
    Ip = prepped["wih_t"].shape[0]
    Hp = prepped["whh_t"].shape[0]
    Op = prepped["wlin_t"].shape[1]
    seq_p = _round_up(seq, SUBLANE)

    x_pad = _pad2d(x.astype(jnp.float32), (seq_p, Ip))

    operands = (x_pad, prepped["wih_t"], prepped["whh_t"], prepped["b"],
                prepped["wlin_t"], prepped["blin"])

    in_bytes = sum(a.size * a.dtype.itemsize for a in operands)
    out_bytes = seq_p * Op * 4
    vmem_limit = int(min(max(4 * (in_bytes + out_bytes) + (1 << 20), 8 << 20),
                         32 << 20))

    cost = pl.CostEstimate(
        flops=2 * seq_p * (Ip * Hp + Hp * Hp + Hp * Op),
        transcendentals=seq_p * Hp,
        bytes_accessed=in_bytes + out_bytes,
    )

    out_padded = pl.pallas_call(
        rnn_linear_kernel,
        out_shape=jax.ShapeDtypeStruct((seq_p, Op), jnp.float32),
        in_specs=[pl.BlockSpec(memory_space=pltpu.MemorySpace.VMEM)] * 6,
        out_specs=pl.BlockSpec(memory_space=pltpu.MemorySpace.VMEM),
        compiler_params=pltpu.CompilerParams(vmem_limit_bytes=vmem_limit),
        cost_estimate=cost,
    )(*operands)

    # Drop padding, re-add the batch dim from x.unsqueeze(0).
    return out_padded[None, :seq, :output_size]


# ---------------------------------------------------------------------------
# Reference + init
# ---------------------------------------------------------------------------
def rnn_model_reference(x, params):
    """Pure-JAX f32 reference matching PyTorch RNNModel.forward."""
    H = params["w_hh"].shape[0]

    def step(h, x_t):
        h_new = jnp.tanh(x_t @ params["w_ih"].T + params["b_ih"]
                         + h @ params["w_hh"].T + params["b_hh"])
        return h_new, h_new

    h0 = jnp.zeros((H,), jnp.float32)
    _, hs = jax.lax.scan(step, h0, x)
    out = hs @ params["w_lin"].T + params["b_lin"]
    return out[None]


def init_params(key, input_size, hidden_size, output_size):
    """Deterministic init mimicking PyTorch's U(-1/sqrt(H), 1/sqrt(H))."""
    ks = jax.random.split(key, 6)
    bound = 1.0 / math.sqrt(hidden_size)
    u = lambda k, shape: jax.random.uniform(
        k, shape, jnp.float32, minval=-bound, maxval=bound)
    return {
        "w_ih": u(ks[0], (hidden_size, input_size)),
        "w_hh": u(ks[1], (hidden_size, hidden_size)),
        "b_ih": u(ks[2], (hidden_size,)),
        "b_hh": u(ks[3], (hidden_size,)),
        "w_lin": u(ks[4], (output_size, hidden_size)),
        "b_lin": u(ks[5], (output_size,)),
    }


if __name__ == "__main__":
    input_size, hidden_size, output_size = 16, 32, 8
    seq_len = 8

    key = jax.random.PRNGKey(0)
    k_x, k_p = jax.random.split(key)
    x = jax.random.normal(k_x, (seq_len, input_size), jnp.float32)
    params = init_params(k_p, input_size, hidden_size, output_size)

    prepped, meta = prepare_params(params)

    out = rnn_model_forward(x, prepped, output_size=meta["output_size"])
    out = jax.block_until_ready(out)
    assert out.shape == (1, seq_len, output_size)

    ref = jax.block_until_ready(rnn_model_reference(x, params))
    max_err = float(jnp.max(jnp.abs(out - ref)))
    assert max_err < 2e-2, f"max abs err {max_err} vs f32 reference"

    print("KERNEL_OK")
</pallas_src>

<mosaic_0001>
module attributes {stable_mosaic.version = 11 : i64} {
  func.func @rnn_linear_kernel(%arg0: memref<8x128xf32, #tpu.memory_space<vmem>>, %arg1: memref<128x128xbf16, #tpu.memory_space<vmem>>, %arg2: memref<128x128xbf16, #tpu.memory_space<vmem>>, %arg3: memref<1x128xf32, #tpu.memory_space<vmem>>, %arg4: memref<128x128xbf16, #tpu.memory_space<vmem>>, %arg5: memref<1x128xf32, #tpu.memory_space<vmem>>, %arg6: memref<8x128xf32, #tpu.memory_space<vmem>>) attributes {dimension_semantics = [], scalar_prefetch = 0 : i64, scratch_operands = 0 : i64, tpu.core_type = #tpu.core_type<tc>} {
    %c0 = arith.constant 0 : index
    %c0_0 = arith.constant 0 : index
    %0 = vector.load %arg0[%c0, %c0_0] : memref<8x128xf32, #tpu.memory_space<vmem>>, vector<8x128xf32>
    %1 = arith.truncf %0 : vector<8x128xf32> to vector<8x128xbf16>
    %c0_1 = arith.constant 0 : index
    %c0_2 = arith.constant 0 : index
    %2 = vector.load %arg1[%c0_1, %c0_2] : memref<128x128xbf16, #tpu.memory_space<vmem>>, vector<128x128xbf16>
    %cst = arith.constant dense<0.000000e+00> : vector<8x128xf32>
    %3 = tpu.matmul %1, %2, %cst {dimension_numbers = #tpu.dot_dimension_numbers<[1], [0], [0], [1], [0, 0, 1, 1], [], []>} : vector<8x128xbf16>, vector<128x128xbf16>, vector<8x128xf32> -> vector<8x128xf32>
    %c0_3 = arith.constant 0 : index
    %c0_4 = arith.constant 0 : index
    %4 = vector.load %arg3[%c0_3, %c0_4] : memref<1x128xf32, #tpu.memory_space<vmem>>, vector<1x128xf32>
    %5 = vector.broadcast %4 : vector<1x128xf32> to vector<8x128xf32>
    %6 = arith.addf %3, %5 : vector<8x128xf32>
    %c0_5 = arith.constant 0 : index
    %c0_6 = arith.constant 0 : index
    %7 = vector.load %arg2[%c0_5, %c0_6] : memref<128x128xbf16, #tpu.memory_space<vmem>>, vector<128x128xbf16>
    %cst_7 = arith.constant 0.000000e+00 : f32
    %8 = vector.broadcast %cst_7 : f32 to vector<1x128xf32>
    %9 = vector.extract_strided_slice %6 {offsets = [0, 0], sizes = [1, 128], strides = [1, 1]} : vector<8x128xf32> to vector<1x128xf32>
    %10 = arith.truncf %8 : vector<1x128xf32> to vector<1x128xbf16>
    %cst_8 = arith.constant dense<0.000000e+00> : vector<1x128xf32>
    %11 = tpu.matmul %10, %7, %cst_8 {dimension_numbers = #tpu.dot_dimension_numbers<[1], [0], [0], [1], [0, 0, 1, 1], [], []>} : vector<1x128xbf16>, vector<128x128xbf16>, vector<1x128xf32> -> vector<1x128xf32>
    %12 = arith.addf %9, %11 : vector<1x128xf32>
    %13 = math.tanh %12 : vector<1x128xf32>
    %14 = vector.extract_strided_slice %6 {offsets = [1, 0], sizes = [1, 128], strides = [1, 1]} : vector<8x128xf32> to vector<1x128xf32>
    %15 = arith.truncf %13 : vector<1x128xf32> to vector<1x128xbf16>
    %cst_9 = arith.constant dense<0.000000e+00> : vector<1x128xf32>
    %16 = tpu.matmul %15, %7, %cst_9 {dimension_numbers = #tpu.dot_dimension_numbers<[1], [0], [0], [1], [0, 0, 1, 1], [], []>} : vector<1x128xbf16>, vector<128x128xbf16>, vector<1x128xf32> -> vector<1x128xf32>
    %17 = arith.addf %14, %16 : vector<1x128xf32>
    %18 = math.tanh %17 : vector<1x128xf32>
    %19 = vector.extract_strided_slice %6 {offsets = [2, 0], sizes = [1, 128], strides = [1, 1]} : vector<8x128xf32> to vector<1x128xf32>
    %20 = arith.truncf %18 : vector<1x128xf32> to vector<1x128xbf16>
    %cst_10 = arith.constant dense<0.000000e+00> : vector<1x128xf32>
    %21 = tpu.matmul %20, %7, %cst_10 {dimension_numbers = #tpu.dot_dimension_numbers<[1], [0], [0], [1], [0, 0, 1, 1], [], []>} : vector<1x128xbf16>, vector<128x128xbf16>, vector<1x128xf32> -> vector<1x128xf32>
    %22 = arith.addf %19, %21 : vector<1x128xf32>
    %23 = math.tanh %22 : vector<1x128xf32>
    %24 = vector.extract_strided_slice %6 {offsets = [3, 0], sizes = [1, 128], strides = [1, 1]} : vector<8x128xf32> to vector<1x128xf32>
    %25 = arith.truncf %23 : vector<1x128xf32> to vector<1x128xbf16>
    %cst_11 = arith.constant dense<0.000000e+00> : vector<1x128xf32>
    %26 = tpu.matmul %25, %7, %cst_11 {dimension_numbers = #tpu.dot_dimension_numbers<[1], [0], [0], [1], [0, 0, 1, 1], [], []>} : vector<1x128xbf16>, vector<128x128xbf16>, vector<1x128xf32> -> vector<1x128xf32>
    %27 = arith.addf %24, %26 : vector<1x128xf32>
    %28 = math.tanh %27 : vector<1x128xf32>
    %29 = vector.extract_strided_slice %6 {offsets = [4, 0], sizes = [1, 128], strides = [1, 1]} : vector<8x128xf32> to vector<1x128xf32>
    %30 = arith.truncf %28 : vector<1x128xf32> to vector<1x128xbf16>
    %cst_12 = arith.constant dense<0.000000e+00> : vector<1x128xf32>
    %31 = tpu.matmul %30, %7, %cst_12 {dimension_numbers = #tpu.dot_dimension_numbers<[1], [0], [0], [1], [0, 0, 1, 1], [], []>} : vector<1x128xbf16>, vector<128x128xbf16>, vector<1x128xf32> -> vector<1x128xf32>
    %32 = arith.addf %29, %31 : vector<1x128xf32>
    %33 = math.tanh %32 : vector<1x128xf32>
    %34 = vector.extract_strided_slice %6 {offsets = [5, 0], sizes = [1, 128], strides = [1, 1]} : vector<8x128xf32> to vector<1x128xf32>
    %35 = arith.truncf %33 : vector<1x128xf32> to vector<1x128xbf16>
    %cst_13 = arith.constant dense<0.000000e+00> : vector<1x128xf32>
    %36 = tpu.matmul %35, %7, %cst_13 {dimension_numbers = #tpu.dot_dimension_numbers<[1], [0], [0], [1], [0, 0, 1, 1], [], []>} : vector<1x128xbf16>, vector<128x128xbf16>, vector<1x128xf32> -> vector<1x128xf32>
    %37 = arith.addf %34, %36 : vector<1x128xf32>
    %38 = math.tanh %37 : vector<1x128xf32>
    %39 = vector.extract_strided_slice %6 {offsets = [6, 0], sizes = [1, 128], strides = [1, 1]} : vector<8x128xf32> to vector<1x128xf32>
    %40 = arith.truncf %38 : vector<1x128xf32> to vector<1x128xbf16>
    %cst_14 = arith.constant dense<0.000000e+00> : vector<1x128xf32>
    %41 = tpu.matmul %40, %7, %cst_14 {dimension_numbers = #tpu.dot_dimension_numbers<[1], [0], [0], [1], [0, 0, 1, 1], [], []>} : vector<1x128xbf16>, vector<128x128xbf16>, vector<1x128xf32> -> vector<1x128xf32>
    %42 = arith.addf %39, %41 : vector<1x128xf32>
    %43 = math.tanh %42 : vector<1x128xf32>
    %44 = vector.extract_strided_slice %6 {offsets = [7, 0], sizes = [1, 128], strides = [1, 1]} : vector<8x128xf32> to vector<1x128xf32>
    %45 = arith.truncf %43 : vector<1x128xf32> to vector<1x128xbf16>
    %cst_15 = arith.constant dense<0.000000e+00> : vector<1x128xf32>
    %46 = tpu.matmul %45, %7, %cst_15 {dimension_numbers = #tpu.dot_dimension_numbers<[1], [0], [0], [1], [0, 0, 1, 1], [], []>} : vector<1x128xbf16>, vector<128x128xbf16>, vector<1x128xf32> -> vector<1x128xf32>
    %47 = arith.addf %44, %46 : vector<1x128xf32>
    %48 = math.tanh %47 : vector<1x128xf32>
    %49 = tpu.concatenate %13, %18, %23, %28, %33, %38, %43, %48 in 0 : vector<1x128xf32>, vector<1x128xf32>, vector<1x128xf32>, vector<1x128xf32>, vector<1x128xf32>, vector<1x128xf32>, vector<1x128xf32>, vector<1x128xf32> -> vector<8x128xf32>
    %50 = arith.truncf %49 : vector<8x128xf32> to vector<8x128xbf16>
    %c0_16 = arith.constant 0 : index
    %c0_17 = arith.constant 0 : index
    %51 = vector.load %arg4[%c0_16, %c0_17] : memref<128x128xbf16, #tpu.memory_space<vmem>>, vector<128x128xbf16>
    %cst_18 = arith.constant dense<0.000000e+00> : vector<8x128xf32>
    %52 = tpu.matmul %50, %51, %cst_18 {dimension_numbers = #tpu.dot_dimension_numbers<[1], [0], [0], [1], [0, 0, 1, 1], [], []>} : vector<8x128xbf16>, vector<128x128xbf16>, vector<8x128xf32> -> vector<8x128xf32>
    %c0_19 = arith.constant 0 : index
    %c0_20 = arith.constant 0 : index
    %53 = vector.load %arg5[%c0_19, %c0_20] : memref<1x128xf32, #tpu.memory_space<vmem>>, vector<1x128xf32>
    %54 = vector.broadcast %53 : vector<1x128xf32> to vector<8x128xf32>
    %55 = arith.addf %52, %54 : vector<8x128xf32>
    %c0_21 = arith.constant 0 : index
    %c0_22 = arith.constant 0 : index
    %56 = vector.load %arg6[%c0_21, %c0_22] : memref<8x128xf32, #tpu.memory_space<vmem>>, vector<8x128xf32>
    tpu.vector_store %arg6[%c0_21, %c0_22], %55 {strides = array<i32>} : memref<8x128xf32, #tpu.memory_space<vmem>>, vector<8x128xf32>,
    return
  }
}

</mosaic_0001>

<bundles_post_ra>
// kernel: rnn_model_forward.1
= control target key start
LH: loop header
LB: loop body
LE: loop exit
PB: predicated region body
PF: predicated region fallthrough
CT: control target
= control target key end

     0   :  { %11 = vsyncpa [#allocation3], 0  ;;  %s834_s0 = inlined_call_operand.vmem [shape: f32[8,128], index: 0, kind: input, shape index: {}]   ;;  %s835_s1 = inlined_call_operand.hbm [shape: bf16[128,128], index: 1, kind: input, shape index: {}]   ;;  %s836_s2 = inlined_call_operand.hbm [shape: bf16[128,128], index: 2, kind: input, shape index: {}]   ;;  %s837_s3 = inlined_call_operand.vmem [shape: f32[1,128], index: 3, kind: input, shape index: {}]   ;;  %s838_s4 = inlined_call_operand.hbm [shape: bf16[128,128], index: 4, kind: input, shape index: {}]   ;;  %s839_s5 = inlined_call_operand.vmem [shape: f32[1,128], index: 5, kind: input, shape index: {}]   ;;  %s840_s6 = inlined_call_operand.vmem [shape: f32[8,128], index: 6, kind: output, shape index: {}]  }
   0x1   :  { %12 = vsyncpa [#allocation5], 0  ;;  %s32_s23 = sshll.u32 %s836_s2, 4  ;;  %s712_s24 = smov [#allocation4]   ;;  %s33_s23 = int_to_ptr.hbm [resolvable:$true] %s32_s23 }
   0x2   :  { %s34_s25 = sshll.u32 %s712_s24, 4  ;;  %s19_s28 = sshll.u32 %s835_s1, 4  ;;  %s35_s25 = int_to_ptr.vmem [resolvable:$true] %s34_s25  ;;  %s20_s28 = int_to_ptr.hbm [resolvable:$true] %s19_s28 }
   0x3   :  { %s713_s29 = smov 64   ;;  %s714_s30 = smov 4  }
   0x4   :  { %40 = dma.hbm_to_vmem [thread:$0]  %s33_s23, 1024, %s35_s25, [#allocation5], %s713_s29, %s713_s29, %s714_s30  }
   0x5   :  { %s715_s7 = smov [#allocation2]   ;;  %s47_s11 = sshll.u32 %s838_s4, 4  ;;  %s48_s11 = int_to_ptr.hbm [resolvable:$true] %s47_s11 }
   0x6   :  { %s21_s8 = sshll.u32 %s715_s7, 4  ;;  %s716_s2 = smov [#allocation6]   ;;  %s22_s8 = int_to_ptr.vmem [resolvable:$true] %s21_s8 }
   0x7   :  { %27 = dma.hbm_to_vmem [thread:$0]  %s20_s28, 1024, %s22_s8, [#allocation3], %s713_s29, %s713_s29, %s714_s30  }
   0x8   :  { %s49_s12 = sshll.u32 %s716_s2, 4  ;;  %s50_s12 = int_to_ptr.vmem [resolvable:$true] %s49_s12 }
   0x9   :  { %55 = dma.hbm_to_vmem [thread:$0]  %s48_s11, 1024, %s50_s12, [#allocation5], %s713_s29, %s713_s29, %s714_s30  }
   0xa   :  { %708 = dma.done.wait [#allocation3], 1024  }
   0xb   :  { %709 = vsyncadd [#allocation3], 4294966272 }
   0xc   :  { %710 = dma.done.wait [#allocation5], 2048  }
   0xd   :  { %711 = vsyncadd [#allocation5], 4294965248  ;;  %v595_v0 = vld [vmem:[#allocation2 + $0x38] sm:$0xff]  ;;  %v594_v2 = vld [vmem:[#allocation2 + $0x30] sm:$0xff]  ;;  %v717_v18 = vmov 0   ;;  %vm389_vm0 = vcmask 1040384  }
   0xe   :  { %v762_v1 = vld [vmem:[#allocation4 + $0x38] sm:$0xff]  ;;  %141 = vmatpush.bf16.msra.mxu0 %v595_v0  ;;  %v765_v3 = vld [vmem:[#allocation4 + $0x30] sm:$0xff]  ;;  %v593_v4 = vld [vmem:[#allocation2 + $0x28] sm:$0xff]  ;;  %vm391_vm1 = vcmask 1041408   ;;  %vm393_vm2 = vcmask 1042432   ;;  %vm395_vm3 = vcmask 1043456  }
   0xf   :  { %218 = vmatpush.bf16.msra.mxu1 %v762_v1  ;;  %234 = vmatpush.bf16.msra.mxu2 %v762_v1  ;;  %v770_v5 = vld [vmem:[#allocation4 + $0x28] sm:$0xff]  ;;  %v592_v6 = vld [vmem:[#allocation2 + $0x20] sm:$0xff]  ;;  %v591_v8 = vld [vmem:[#allocation2 + $0x18] sm:$0xff]  ;;  %vm397_vm4 = vcmask 1044480   ;;  %vm399_vm5 = vcmask 1045504   ;;  %vm401_vm6 = vcmask 1046528  }
  0x10   :  { %257 = vmatpush.bf16.msra.mxu3 %v762_v1  ;;  %v775_v7 = vld [vmem:[#allocation4 + $0x20] sm:$0xff]  ;;  %v780_v9 = vld [vmem:[#allocation4 + $0x18] sm:$0xff]  ;;  %v590_v10 = vld [vmem:[#allocation2 + $0x10] sm:$0xff] }
  0x11   :  { %v598_v11 = vld [vmem:[#allocation4 + $0x10] sm:$0xff]  ;;  %v589_v12 = vld [vmem:[#allocation2 + $0x8] sm:$0xff]  ;;  %v588_v14 = vld [vmem:[#allocation2] sm:$0xff] }
  0x12   :  { %142 = vmatpush.bf16.msra.mxu0 %v594_v2  ;;  %v597_v13 = vld [vmem:[#allocation4 + $0x8] sm:$0xff]  ;;  %v596_v15 = vld [vmem:[#allocation4] sm:$0xff] }
  0x13   :  { %219 = vmatpush.bf16.msra.mxu1 %v765_v3  ;;  %235 = vmatpush.bf16.msra.mxu2 %v765_v3  ;;  %v71_v16 = vld [vmem:[%s834_s0] sm:$0xff] }
  0x14   :  { %258 = vmatpush.bf16.msra.mxu3 %v765_v3  ;;  %v72_v17 = vpack.c.bf16 %v71_v16, %v71_v16  ;;  %v618_v19 = vld [vmem:[%s837_s3] ss:$0 sm:$0xff] }
  0x16   :  { %143 = vmatpush.bf16.msra.mxu0 %v593_v4 }
  0x17   :  { %220 = vmatpush.bf16.msra.mxu1 %v770_v5  ;;  %236 = vmatpush.bf16.msra.mxu2 %v770_v5 }
  0x18   :  { %259 = vmatpush.bf16.msra.mxu3 %v770_v5 }
  0x1a   :  { %144 = vmatpush.bf16.msra.mxu0 %v592_v6  ;;  %v611_v6 = vld [vmem:[#allocation6 + $0x38] sm:$0xff] }
  0x1b   :  { %221 = vmatpush.bf16.msra.mxu1 %v775_v7  ;;  %237 = vmatpush.bf16.msra.mxu2 %v775_v7 }
  0x1c   :  { %260 = vmatpush.bf16.msra.mxu3 %v775_v7 }
  0x1e   :  { %145 = vmatpush.bf16.msra.mxu0 %v591_v8  ;;  %v609_v8 = vld [vmem:[#allocation6 + $0x28] sm:$0xff] }
  0x1f   :  { %222 = vmatpush.bf16.msra.mxu1 %v780_v9  ;;  %238 = vmatpush.bf16.msra.mxu2 %v780_v9 }
  0x20   :  { %261 = vmatpush.bf16.msra.mxu3 %v780_v9 }
  0x22   :  { %146 = vmatpush.bf16.msra.mxu0 %v590_v10 }
  0x23   :  { %223 = vmatpush.bf16.msra.mxu1 %v598_v11  ;;  %239 = vmatpush.bf16.msra.mxu2 %v598_v11 }
  0x24   :  { %262 = vmatpush.bf16.msra.mxu3 %v598_v11 }
  0x26   :  { %147 = vmatpush.bf16.msra.mxu0 %v589_v12 }
  0x27   :  { %224 = vmatpush.bf16.msra.mxu1 %v597_v13  ;;  %240 = vmatpush.bf16.msra.mxu2 %v597_v13 }
  0x28   :  { %263 = vmatpush.bf16.msra.mxu3 %v597_v13 }
  0x2a   :  { %148 = vmatpush.bf16.msra.mxu0 %v588_v14 }
  0x2b   :  { %225 = vmatpush.bf16.msra.mxu1 %v596_v15  ;;  %241 = vmatpush.bf16.msra.mxu2 %v596_v15 }
  0x2c   :  { %264 = vmatpush.bf16.msra.mxu3 %v596_v15 }
  0x2d   :  { %149 = vmatmul.bf16.vlgmr.msra.gmra.mxu0 %v72_v17 }
  0x2e   :  { %279 = vmatpush.bf16.msrb.mxu0 %v762_v1  ;;  %226 = vmatmul.bf16.vlgmr.msra.gmra.mxu1 %v717_v18  ;;  %v607_v18 = vld [vmem:[#allocation6 + $0x18] sm:$0xff] }
  0x2f   :  { %303 = vmatpush.bf16.msrb.mxu1 %v762_v1  ;;  %325 = vmatpush.bf16.msrb.mxu2 %v762_v1 }
  0x30   :  { %349 = vmatpush.bf16.msrb.mxu3 %v762_v1 }
  0x32   :  { %280 = vmatpush.bf16.msrb.mxu0 %v765_v3 }
  0x33   :  { %304 = vmatpush.bf16.msrb.mxu1 %v765_v3  ;;  %326 = vmatpush.bf16.msrb.mxu2 %v765_v3 }
  0x34   :  { %350 = vmatpush.bf16.msrb.mxu3 %v765_v3 }
  0x36   :  { %281 = vmatpush.bf16.msrb.mxu0 %v770_v5 }
  0x37   :  { %305 = vmatpush.bf16.msrb.mxu1 %v770_v5  ;;  %327 = vmatpush.bf16.msrb.mxu2 %v770_v5 }
  0x38   :  { %351 = vmatpush.bf16.msrb.mxu3 %v770_v5 }
  0x3a   :  { %282 = vmatpush.bf16.msrb.mxu0 %v775_v7 }
  0x3b   :  { %306 = vmatpush.bf16.msrb.mxu1 %v775_v7  ;;  %328 = vmatpush.bf16.msrb.mxu2 %v775_v7 }
  0x3c   :  { %352 = vmatpush.bf16.msrb.mxu3 %v775_v7 }
  0x3e   :  { %283 = vmatpush.bf16.msrb.mxu0 %v780_v9 }
  0x3f   :  { %307 = vmatpush.bf16.msrb.mxu1 %v780_v9  ;;  %329 = vmatpush.bf16.msrb.mxu2 %v780_v9 }
  0x40   :  { %353 = vmatpush.bf16.msrb.mxu3 %v780_v9 }
  0x42   :  { %284 = vmatpush.bf16.msrb.mxu0 %v598_v11 }
  0x43   :  { %308 = vmatpush.bf16.msrb.mxu1 %v598_v11  ;;  %330 = vmatpush.bf16.msrb.mxu2 %v598_v11 }
  0x44   :  { %354 = vmatpush.bf16.msrb.mxu3 %v598_v11 }
  0x46   :  { %285 = vmatpush.bf16.msrb.mxu0 %v597_v13 }
  0x47   :  { %309 = vmatpush.bf16.msrb.mxu1 %v597_v13  ;;  %331 = vmatpush.bf16.msrb.mxu2 %v597_v13 }
  0x48   :  { %355 = vmatpush.bf16.msrb.mxu3 %v597_v13 }
  0x4a   :  { %286 = vmatpush.bf16.msrb.mxu0 %v596_v15 }
  0x4b   :  { %310 = vmatpush.bf16.msrb.mxu1 %v596_v15  ;;  %332 = vmatpush.bf16.msrb.mxu2 %v596_v15 }
  0x4c   :  { %356 = vmatpush.bf16.msrb.mxu3 %v596_v15 }
  0x4e   :  { %371 = vmatpush.bf16.msra.mxu0 %v762_v1 }
  0x4f   :  { %472 = vmatpush.bf16.msra.mxu1 %v611_v6 }
  0x52   :  { %372 = vmatpush.bf16.msra.mxu0 %v765_v3 }
  0x56   :  { %373 = vmatpush.bf16.msra.mxu0 %v770_v5 }
  0x5a   :  { %374 = vmatpush.bf16.msra.mxu0 %v775_v7  ;;  %v610_v7 = vld [vmem:[#allocation6 + $0x30] sm:$0xff] }
  0x5b   :  { %473 = vmatpush.bf16.msra.mxu1 %v610_v7 }
  0x5e   :  { %375 = vmatpush.bf16.msra.mxu0 %v780_v9  ;;  %v608_v9 = vld [vmem:[#allocation6 + $0x20] sm:$0xff] }
  0x5f   :  { %474 = vmatpush.bf16.msra.mxu1 %v609_v8 }
  0x62   :  { %376 = vmatpush.bf16.msra.mxu0 %v598_v11 }
  0x63   :  { %475 = vmatpush.bf16.msra.mxu1 %v608_v9 }
  0x66   :  { %377 = vmatpush.bf16.msra.mxu0 %v597_v13 }
  0x67   :  { %476 = vmatpush.bf16.msra.mxu1 %v607_v18 }
  0x6a   :  { %378 = vmatpush.bf16.msra.mxu0 %v596_v15 }
  0xaa   :  { %v150_v20 = vpop.f32.mrf.mxu0 }
  0xab   :  { %v227_v21 = vpop.f32.mrf.mxu1  ;;  %v818_v22 = vadd.f32 %v618_v19, %v150_v20  ;;  %v606_v19 = vld [vmem:[#allocation6 + $0x10] sm:$0xff]  ;;  %v605_v20 = vld [vmem:[#allocation6 + $0x8] sm:$0xff] }
  0xac   :  { %477 = vmatpush.bf16.msra.mxu1 %v606_v19 }
  0xad   :  { %v231_v23 = vadd.f32 %v227_v21, %v818_v22  ;;  %v604_v21 = vld [vmem:[#allocation6] sm:$0xff] }
  0xaf   :  { %620 = vtanh.f32 %v231_v23 }
  0xb0   :  { %478 = vmatpush.bf16.msra.mxu1 %v605_v20 }
  0xb2   :  { %v152_v24 = vpop.f32.mrf.mxu0 }
  0xb3   :  { %v229_v25 = vpop.f32.mrf.mxu1 }
  0xb4   :  { %479 = vmatpush.bf16.msra.mxu1 %v604_v21 }
  0xb5   :  { %v621_v26 = vpop.eup %620 }
  0xb6   :  { %v233_v27 = vpack.c.bf16 %v621_v26, %v621_v26 }
  0xb8   :  { %242 = vmatmul.bf16.vlgmr.msra.gmra.mxu2 %v233_v27 }
 0x13b   :  { %v243_v28 = vpop.f32.mrf.mxu2 }
 0x13c   :  { %v248_v29 = vrot.slane %v243_v28, 7 }
 0x13e   :  { %v250_v30 = vadd.f32 %v248_v29, %v818_v22 }
 0x140   :  { %622 = vtanh.f32 %v250_v30  ;;  %v619_v30 = vld [vmem:[%s839_s5] ss:$0 sm:$0xff] }
 0x143   :  { %v245_v31 = vpop.f32.mrf.mxu2 }
 0x146   :  { %v623_v32 = vpop.eup %622 }
 0x147   :  { %v252_v33 = vpack.c.bf16 %v623_v32, %v623_v32  ;;  %v390_v40 = vsel %vm389_vm0, %v621_v26, %v623_v32 }
 0x149   :  { %v254_v34 = vshrl.u32 %v252_v33, 16 }
 0x14b   :  { %265 = vmatmul.bf16.vlgmr.msra.gmra.mxu3 %v254_v34 }
 0x1ce   :  { %v266_v35 = vpop.f32.mrf.mxu3 }
 0x1cf   :  { %v271_v36 = vrot.slane %v266_v35, 6 }
 0x1d1   :  { %v273_v37 = vadd.f32 %v271_v36, %v818_v22 }
 0x1d3   :  { %624 = vtanh.f32 %v273_v37 }
 0x1d6   :  { %v268_v38 = vpop.f32.mrf.mxu3 }
 0x1d9   :  { %v625_v39 = vpop.eup %624 }
 0x1da   :  { %v392_v41 = vsel %vm391_vm1, %v390_v40, %v625_v39  ;;  %v275_v42 = vpack.c.bf16 %v625_v39, %v625_v39 }
 0x1dc   :  { %v277_v43 = vrot.slane %v275_v42, 1 }
 0x1de   :  { %287 = vmatmul.bf16.vlgmr.msrb.gmra.mxu0 %v277_v43 }
 0x25b   :  { %v288_v44 = vpop.f32.mrf.mxu0 }
 0x25c   :  { %v293_v45 = vrot.slane %v288_v44, 5 }
 0x25e   :  { %v295_v46 = vadd.f32 %v293_v45, %v818_v22 }
 0x260   :  { %626 = vtanh.f32 %v295_v46 }
 0x263   :  { %v290_v47 = vpop.f32.mrf.mxu0 }
 0x266   :  { %v627_v48 = vpop.eup %626 }
 0x267   :  { %v297_v49 = vpack.c.bf16 %v627_v48, %v627_v48  ;;  %v394_v50 = vsel %vm393_vm2, %v392_v41, %v627_v48 }
 0x269   :  { %v299_v51 = vshrl.u32 %v297_v49, 16 }
 0x26b   :  { %v301_v52 = vrot.slane %v299_v51, 1 }
 0x26d   :  { %311 = vmatmul.bf16.vlgmr.msrb.gmra.mxu1 %v301_v52 }
 0x2ea   :  { %v312_v53 = vpop.f32.mrf.mxu1 }
 0x2eb   :  { %v317_v54 = vrot.slane %v312_v53, 4 }
 0x2ed   :  { %v319_v55 = vadd.f32 %v317_v54, %v818_v22 }
 0x2ef   :  { %628 = vtanh.f32 %v319_v55 }
 0x2f2   :  { %v314_v56 = vpop.f32.mrf.mxu1 }
 0x2f5   :  { %v629_v57 = vpop.eup %628 }
 0x2f6   :  { %v321_v58 = vpack.c.bf16 %v629_v57, %v629_v57  ;;  %v396_v59 = vsel %vm395_vm3, %v394_v50, %v629_v57 }
 0x2f8   :  { %v323_v60 = vrot.slane %v321_v58, 2 }
 0x2fa   :  { %333 = vmatmul.bf16.vlgmr.msrb.gmra.mxu2 %v323_v60 }
 0x37d   :  { %v334_v61 = vpop.f32.mrf.mxu2 }
 0x37e   :  { %v339_v62 = vrot.slane %v334_v61, 3 }
 0x380   :  { %v341_v63 = vadd.f32 %v339_v62, %v818_v22 }
 0x382   :  { %630 = vtanh.f32 %v341_v63 }
 0x385   :  { %v336_v0 = vpop.f32.mrf.mxu2 }
 0x388   :  { %v631_v1 = vpop.eup %630 }
 0x389   :  { %v343_v2 = vpack.c.bf16 %v631_v1, %v631_v1  ;;  %v398_v3 = vsel %vm397_vm4, %v396_v59, %v631_v1 }
 0x38b   :  { %v345_v4 = vshrl.u32 %v343_v2, 16 }
 0x38d   :  { %v347_v5 = vrot.slane %v345_v4, 2 }
 0x38f   :  { %357 = vmatmul.bf16.vlgmr.msrb.gmra.mxu3 %v347_v5 }
 0x412   :  { %v358_v10 = vpop.f32.mrf.mxu3 }
 0x413   :  { %v363_v11 = vrot.slane %v358_v10, 2 }
 0x415   :  { %v365_v12 = vadd.f32 %v363_v11, %v818_v22 }
 0x417   :  { %632 = vtanh.f32 %v365_v12 }
 0x41a   :  { %v360_v13 = vpop.f32.mrf.mxu3 }
 0x41d   :  { %v633_v14 = vpop.eup %632 }
 0x41e   :  { %v367_v15 = vpack.c.bf16 %v633_v14, %v633_v14  ;;  %v400_v16 = vsel %vm399_vm5, %v398_v3, %v633_v14 }
 0x420   :  { %v369_v17 = vrot.slane %v367_v15, 3 }
 0x422   :  { %379 = vmatmul.bf16.vlgmr.msra.gmra.mxu0 %v369_v17 }
 0x49f   :  { %v380_v23 = vpop.f32.mrf.mxu0 }
 0x4a0   :  { %v385_v24 = vrot.slane %v380_v23, 1 }
 0x4a2   :  { %v387_v25 = vadd.f32 %v385_v24, %v818_v22 }
 0x4a4   :  { %634 = vtanh.f32 %v387_v25 }
 0x4a7   :  { %v382_v26 = vpop.f32.mrf.mxu0 }
 0x4aa   :  { %v635_v27 = vpop.eup %634 }
 0x4ab   :  { %v402_v28 = vsel %vm401_vm6, %v400_v16, %v635_v27 }
 0x4ac   :  { %v403_v29 = vpack.c.bf16 %v402_v28, %v402_v28 }
 0x4ae   :  { %480 = vmatmul.bf16.vlgmr.msra.gmra.mxu1 %v403_v29 }
 0x52b   :  { %v481_v31 = vpop.f32.mrf.mxu1 }
 0x52c   :  { %v482_v32 = vadd.f32 %v619_v30, %v481_v31 }
 0x52e   :  { %485 = vst [vmem:[%s840_s6] sm:$0xff] %v482_v32 }
 0x533   :  { %v483_v33 = vpop.f32.mrf.mxu1 }
 0x534   :  { %490 = vsyncpa [#allocation3], 1 }
 0x535   :  { %491 = vsyncpa [#allocation5], 1 }

</bundles_post_ra>
